<compile_context>
chip_gen: v6e
topology: v6e:2x2x1
jax: 0.10.0
libtpu: 0.0.40
codegen_flags: <defaults>
</compile_context>

<pallas_src>
import functools
from typing import NamedTuple

import jax
import jax.numpy as jnp
from jax.experimental import pallas as pl
from jax.experimental.pallas import tpu as pltpu

_NEG_FILL = -1e30  # mask value for padded output-logit columns (finite -> no NaNs)


def _round_up(n, m):
    return ((n + m - 1) // m) * m


class PackedMLP(NamedTuple):
    w1_t: jax.Array   # (In_p, H_p) bf16, transposed + zero-padded
    b1_p: jax.Array   # (1, H_p)    f32,  zero-padded
    w2_t: jax.Array   # (H_p, O_p)  bf16, transposed + zero-padded
    b2_p: jax.Array   # (1, O_p)    f32,  padded cols = -1e30 (softmax mask)
    in_size: int
    out_size: int


def prepare_mlp_params(w1, b1, w2, b2):
    """One-time pre-pack (hoisted out of the per-call path).

    PyTorch layouts: w1 (H, In), b1 (H,), w2 (O, H), b2 (O,). Transposes to
    (in, out), pads every dim to a lane-dense multiple of 128, casts matmul
    operands to bf16. Padded output columns of b2 get -1e30 so the softmax
    assigns them exactly zero weight.
    """
    H, In = w1.shape
    O = w2.shape[0]
    In_p, H_p, O_p = (_round_up(d, 128) for d in (In, H, O))
    w1_t = jnp.zeros((In_p, H_p), jnp.bfloat16).at[:In, :H].set(w1.T.astype(jnp.bfloat16))
    b1_p = jnp.zeros((1, H_p), jnp.float32).at[0, :H].set(b1.astype(jnp.float32))
    w2_t = jnp.zeros((H_p, O_p), jnp.bfloat16).at[:H, :O].set(w2.T.astype(jnp.bfloat16))
    b2_p = jnp.full((1, O_p), _NEG_FILL, jnp.float32).at[0, :O].set(b2.astype(jnp.float32))
    return PackedMLP(w1_t, b1_p, w2_t, b2_p, int(In), int(O))


def mlp_kernel(x_ref, w1_ref, b1_ref, w2_ref, b2_ref, o_ref, acc_ref):
    k = pl.program_id(1)

    @pl.when(k == 0)
    def _init():
        acc_ref[...] = jnp.zeros_like(acc_ref)

    # fc1 hidden-chunk: bf16 x bf16 -> f32 MXU accumulate, bias + ReLU in f32.
    h = jnp.dot(x_ref[...], w1_ref[...], preferred_element_type=jnp.float32)
    h = jnp.maximum(h + b1_ref[...], 0.0)                         # (tm, tk) + (1, tk)
    # fc2 hidden-chunk: accumulate logits into the f32 VMEM accumulator.
    acc_ref[...] += jnp.dot(h.astype(jnp.bfloat16), w2_ref[...],
                            preferred_element_type=jnp.float32)

    @pl.when(k == pl.num_programs(1) - 1)
    def _finalize():
        logits = acc_ref[...] + b2_ref[...]           # padded cols -> -1e30
        m = jnp.max(logits, axis=1, keepdims=True)
        e = jnp.exp(logits - m)                       # padded cols -> exactly 0
        denom = jnp.sum(e, axis=1, keepdims=True)
        o_ref[...] = (e / denom).astype(o_ref.dtype)  # exact normalization


def _pick_tm(B, block_b):
    """Batch tile: multiple of 16 (bf16 sublane packing), prefer MXU-sized (>=256)
    tiles, and cap ragged-tail padding waste at ~10%."""
    upper = min(block_b, _round_up(B, 16))
    candidates = [c for c in (1024, 512, 256, 128, 64, 32, 16) if c <= upper]
    if not candidates:
        return 16
    for c in candidates:
        padded = _round_up(B, c)
        if padded - B <= 0.1 * padded:
            return c
    return candidates[-1]


def _pick_tk(H_p):
    """Hidden-dim chunk: largest multiple of 128 (<= 512) that divides H_p."""
    for c in (512, 256, 128):
        if H_p % c == 0:
            return c
    return 128


def _vmem_bytes(tm, tk, In_p, O_p, nk):
    """Estimated VMEM footprint of one grid step, including pipeline buffers."""
    wbuf = 1 if nk == 1 else 2          # weight chunks only stream when nk > 1
    return (
        wbuf * In_p * tk * 2            # w1 chunk(s), bf16
        + wbuf * tk * O_p * 2           # w2 chunk(s), bf16
        + wbuf * 8 * tk * 4             # b1 chunk(s), f32 (sublane-padded)
        + 8 * O_p * 4                   # b2 (constant, single buffer)
        + 2 * tm * In_p * 2             # x tile, bf16, double buffered
        + 2 * tm * O_p * 4              # out tile, f32, double buffered
        + tm * O_p * 4                  # logits accumulator scratch, f32
        + tm * tk * (4 + 2)             # h intermediate (f32 + bf16 copy)
    )


def _vmem_cap_bytes():
    """Per-generation usable VMEM budget (v7x: 64 MiB/TC; v5e/v6e: 128 MiB)."""
    try:
        kind = jax.devices()[0].device_kind.lower()
    except Exception:
        kind = ""
    if "v7" in kind or "7x" in kind:
        return 48 << 20
    return 100 << 20


def _single_buffered_spec(shape, index_map):
    """BlockSpec for blocks whose index never changes: skip double-buffering."""
    buffered = getattr(pl, "Buffered", None)
    if buffered is not None:
        try:
            return pl.BlockSpec(shape, index_map, pipeline_mode=buffered(1))
        except TypeError:   # older jax without pipeline_mode kwarg
            pass
    return pl.BlockSpec(shape, index_map)


@functools.partial(
    jax.jit,
    static_argnames=("in_size", "out_size", "block_b", "vmem_cap", "out_dtype"))
def _mlp_forward_impl(x, w1_t, b1_p, w2_t, b2_p, *, in_size, out_size,
                      block_b, vmem_cap, out_dtype):
    B, In = x.shape
    assert In == in_size, f"x feature dim {In} != packed in_size {in_size}"
    In_p, H_p = w1_t.shape
    O_p = w2_t.shape[1]

    # --- tile selection + derived VMEM budget (shrink until it fits the chip) ---
    tm = _pick_tm(B, block_b)
    tk = _pick_tk(H_p)
    while _vmem_bytes(tm, tk, In_p, O_p, H_p // tk) > vmem_cap and (tm > 16 or tk > 128):
        if tm > 16:
            tm = max(16, tm // 2)
        else:
            tk = max(128, tk // 2)
    nk = H_p // tk
    need = _vmem_bytes(tm, tk, In_p, O_p, nk)
    if need > vmem_cap:
        raise ValueError(
            f"MLP tiles do not fit VMEM even at minimum tiling ({need} B > {vmem_cap} B)")
    vmem_limit = min(vmem_cap, max(32 << 20, int(need * 1.25) + (2 << 20)))

    B_p = _round_up(B, tm)
    nb = B_p // tm

    # --- x prep: fast path when already tile-aligned (no padding copy) ---
    if B == B_p and In == In_p:
        x_p = x if x.dtype == jnp.bfloat16 else x.astype(jnp.bfloat16)
    else:
        x_p = jnp.zeros((B_p, In_p), jnp.bfloat16).at[:B, :In].set(x.astype(jnp.bfloat16))

    # Weight/bias chunks stream over the hidden axis only when nk > 1; otherwise
    # their block index is constant -> single buffer (halves weight VMEM on v7x).
    w_spec = pl.BlockSpec if nk > 1 else _single_buffered_spec

    out_p = pl.pallas_call(
        mlp_kernel,
        out_shape=jax.ShapeDtypeStruct((B_p, O_p), out_dtype),
        grid=(nb, nk),
        in_specs=[
            pl.BlockSpec((tm, In_p), lambda i, k: (i, 0)),          # x: streamed over batch
            w_spec((In_p, tk), lambda i, k: (0, k)),                # w1_t hidden-chunk
            w_spec((1, tk), lambda i, k: (0, k)),                   # b1 hidden-chunk
            w_spec((tk, O_p), lambda i, k: (k, 0)),                 # w2_t hidden-chunk
            _single_buffered_spec((1, O_p), lambda i, k: (0, 0)),   # b2 (constant, -1e30 pad)
        ],
        out_specs=pl.BlockSpec((tm, O_p), lambda i, k: (i, 0)),
        scratch_shapes=[pltpu.VMEM((tm, O_p), jnp.float32)],        # logits accumulator
        compiler_params=pltpu.CompilerParams(
            dimension_semantics=("parallel", "arbitrary"),          # megacore over batch
            vmem_limit_bytes=vmem_limit,
        ),
    )(x_p, w1_t, b1_p, w2_t, b2_p)

    return out_p[:B, :out_size]


def mlp_forward(x, params: PackedMLP, *, block_b=1024, out_dtype=jnp.float32):
    """Fused MLP forward: softmax(relu(x @ w1.T + b1) @ w2.T + b2, dim=1).

    `params` must come from prepare_mlp_params (pre-transposed/padded/bf16).
    out_dtype=jnp.bfloat16 is available to halve the output write stream on v5e.
    """
    return _mlp_forward_impl(
        x, params.w1_t, params.b1_p, params.w2_t, params.b2_p,
        in_size=params.in_size, out_size=params.out_size,
        block_b=block_b, vmem_cap=_vmem_cap_bytes(), out_dtype=out_dtype)


def init_mlp_params(key, input_size, hidden_size, output_size):
    """Mimics PyTorch nn.Linear default init: U[-1/sqrt(fan_in), 1/sqrt(fan_in)]."""
    k1, k2, k3, k4 = jax.random.split(key, 4)
    bound1 = 1.0 / jnp.sqrt(input_size)
    bound2 = 1.0 / jnp.sqrt(hidden_size)
    w1 = jax.random.uniform(k1, (hidden_size, input_size), jnp.float32, -bound1, bound1)
    b1 = jax.random.uniform(k2, (hidden_size,), jnp.float32, -bound1, bound1)
    w2 = jax.random.uniform(k3, (output_size, hidden_size), jnp.float32, -bound2, bound2)
    b2 = jax.random.uniform(k4, (output_size,), jnp.float32, -bound2, bound2)
    return w1, b1, w2, b2


def reference_mlp(x, w1, b1, w2, b2):
    h = jnp.maximum(x @ w1.T + b1, 0.0)
    logits = h @ w2.T + b2
    return jax.nn.softmax(logits, axis=1)


if __name__ == "__main__":
    input_size, hidden_size, output_size = 32, 64, 16
    batch = 8

    key = jax.random.PRNGKey(0)
    kx, kp = jax.random.split(key)
    x = jax.random.normal(kx, (batch, input_size), jnp.float32)
    w1, b1, w2, b2 = init_mlp_params(kp, input_size, hidden_size, output_size)

    packed = prepare_mlp_params(w1, b1, w2, b2)   # one-time pre-pack (hoisted out of forward)
    out = mlp_forward(x, packed)
    out = jax.block_until_ready(out)

    ref = reference_mlp(x, w1, b1, w2, b2)
    assert out.shape == (batch, output_size)
    # bf16 matmul operands -> relaxed tolerance vs the f32 reference.
    assert jnp.allclose(out, ref, atol=3e-2, rtol=3e-2), "mismatch vs reference"
    # Exact softmax divide -> rows sum to 1 to f32 precision.
    assert jnp.allclose(jnp.sum(out, axis=1), 1.0, atol=1e-5), "softmax rows must sum to 1"

    print("KERNEL_OK")
</pallas_src>

<mosaic_0001>
module attributes {stable_mosaic.version = 11 : i64} {
  func.func @mlp_kernel(%arg0: i32, %arg1: i32, %arg2: memref<16x128xbf16, #tpu.memory_space<vmem>>, %arg3: memref<128x128xbf16, #tpu.memory_space<vmem>>, %arg4: memref<1x128xf32, #tpu.memory_space<vmem>>, %arg5: memref<128x128xbf16, #tpu.memory_space<vmem>>, %arg6: memref<1x128xf32, #tpu.memory_space<vmem>>, %arg7: memref<16x128xf32, #tpu.memory_space<vmem>>, %arg8: memref<16x128xf32, #tpu.memory_space<vmem>>) attributes {dimension_semantics = [#tpu.dimension_semantics<parallel>, #tpu.dimension_semantics<arbitrary>], iteration_bounds = array<i64: 1, 1>, scalar_prefetch = 0 : i64, scratch_operands = 1 : i64, tpu.core_type = #tpu.core_type<tc>, window_params = [{transform_indices = @transform_0, window_bounds = array<i64: 16, 128>}, {pipeline_mode = #tpu.pipeline_mode<synchronous>, transform_indices = @transform_1, window_bounds = array<i64: 128, 128>}, {pipeline_mode = #tpu.pipeline_mode<synchronous>, transform_indices = @transform_2, window_bounds = array<i64: 1, 128>}, {pipeline_mode = #tpu.pipeline_mode<synchronous>, transform_indices = @transform_3, window_bounds = array<i64: 128, 128>}, {pipeline_mode = #tpu.pipeline_mode<synchronous>, transform_indices = @transform_4, window_bounds = array<i64: 1, 128>}, {transform_indices = @transform_5, window_bounds = array<i64: 16, 128>}]} {
    %c0_i32 = arith.constant 0 : i32
    %0 = arith.cmpi eq, %arg1, %c0_i32 : i32
    %1 = arith.extui %0 : i1 to i32
    %c0_i32_0 = arith.constant 0 : i32
    %2 = arith.cmpi ne, %1, %c0_i32_0 : i32
    scf.if %2 {
      %cst_16 = arith.constant 0.000000e+00 : f32
      %20 = vector.broadcast %cst_16 : f32 to vector<16x128xf32>
      %c0_17 = arith.constant 0 : index
      %c0_18 = arith.constant 0 : index
      %21 = vector.load %arg8[%c0_17, %c0_18] : memref<16x128xf32, #tpu.memory_space<vmem>>, vector<16x128xf32>
      tpu.vector_store %arg8[%c0_17, %c0_18], %20 {strides = array<i32>} : memref<16x128xf32, #tpu.memory_space<vmem>>, vector<16x128xf32>,
    } else {
    }
    %c0 = arith.constant 0 : index
    %c0_1 = arith.constant 0 : index
    %3 = vector.load %arg2[%c0, %c0_1] : memref<16x128xbf16, #tpu.memory_space<vmem>>, vector<16x128xbf16>
    %c0_2 = arith.constant 0 : index
    %c0_3 = arith.constant 0 : index
    %4 = vector.load %arg3[%c0_2, %c0_3] : memref<128x128xbf16, #tpu.memory_space<vmem>>, vector<128x128xbf16>
    %cst = arith.constant dense<0.000000e+00> : vector<16x128xf32>
    %5 = tpu.matmul %3, %4, %cst {dimension_numbers = #tpu.dot_dimension_numbers<[1], [0], [0], [1], [0, 0, 1, 1], [], []>} : vector<16x128xbf16>, vector<128x128xbf16>, vector<16x128xf32> -> vector<16x128xf32>
    %c0_4 = arith.constant 0 : index
    %c0_5 = arith.constant 0 : index
    %6 = vector.load %arg4[%c0_4, %c0_5] : memref<1x128xf32, #tpu.memory_space<vmem>>, vector<1x128xf32>
    %7 = vector.broadcast %6 : vector<1x128xf32> to vector<16x128xf32>
    %8 = arith.addf %5, %7 : vector<16x128xf32>
    %cst_6 = arith.constant 0.000000e+00 : f32
    %9 = vector.broadcast %cst_6 : f32 to vector<16x128xf32>
    %10 = arith.maximumf %8, %9 : vector<16x128xf32>
    %c0_7 = arith.constant 0 : index
    %c0_8 = arith.constant 0 : index
    %11 = vector.load %arg8[%c0_7, %c0_8] : memref<16x128xf32, #tpu.memory_space<vmem>>, vector<16x128xf32>
    %12 = arith.truncf %10 : vector<16x128xf32> to vector<16x128xbf16>
    %c0_9 = arith.constant 0 : index
    %c0_10 = arith.constant 0 : index
    %13 = vector.load %arg5[%c0_9, %c0_10] : memref<128x128xbf16, #tpu.memory_space<vmem>>, vector<128x128xbf16>
    %cst_11 = arith.constant dense<0.000000e+00> : vector<16x128xf32>
    %14 = tpu.matmul %12, %13, %cst_11 {dimension_numbers = #tpu.dot_dimension_numbers<[1], [0], [0], [1], [0, 0, 1, 1], [], []>} : vector<16x128xbf16>, vector<128x128xbf16>, vector<16x128xf32> -> vector<16x128xf32>
    %15 = arith.addf %11, %14 : vector<16x128xf32>
    %c0_12 = arith.constant 0 : index
    %c0_13 = arith.constant 0 : index
    %16 = vector.load %arg8[%c0_12, %c0_13] : memref<16x128xf32, #tpu.memory_space<vmem>>, vector<16x128xf32>
    tpu.vector_store %arg8[%c0_12, %c0_13], %15 {strides = array<i32>} : memref<16x128xf32, #tpu.memory_space<vmem>>, vector<16x128xf32>,
    %c0_i32_14 = arith.constant 0 : i32
    %17 = arith.cmpi eq, %arg1, %c0_i32_14 : i32
    %18 = arith.extui %17 : i1 to i32
    %c0_i32_15 = arith.constant 0 : i32
    %19 = arith.cmpi ne, %18, %c0_i32_15 : i32
    scf.if %19 {
      %c0_16 = arith.constant 0 : index
      %c0_17 = arith.constant 0 : index
      %20 = vector.load %arg8[%c0_16, %c0_17] : memref<16x128xf32, #tpu.memory_space<vmem>>, vector<16x128xf32>
      %c0_18 = arith.constant 0 : index
      %c0_19 = arith.constant 0 : index
      %21 = vector.load %arg6[%c0_18, %c0_19] : memref<1x128xf32, #tpu.memory_space<vmem>>, vector<1x128xf32>
      %22 = vector.broadcast %21 : vector<1x128xf32> to vector<16x128xf32>
      %23 = arith.addf %20, %22 : vector<16x128xf32>
      %cst_20 = arith.constant dense<0xFF800000> : vector<16xf32>
      %24 = vector.multi_reduction <maximumf>, %23, %cst_20 [1] : vector<16x128xf32> to vector<16xf32>
      %25 = vector.shape_cast %24 : vector<16xf32> to vector<16x1xf32>
      %26 = vector.broadcast %25 : vector<16x1xf32> to vector<16x128xf32>
      %27 = arith.subf %23, %26 : vector<16x128xf32>
      %28 = math.exp %27 : vector<16x128xf32>
      %cst_21 = arith.constant dense<0.000000e+00> : vector<16xf32>
      %29 = vector.multi_reduction <add>, %28, %cst_21 [1] : vector<16x128xf32> to vector<16xf32>
      %30 = vector.shape_cast %29 : vector<16xf32> to vector<16x1xf32>
      %31 = vector.broadcast %30 : vector<16x1xf32> to vector<16x128xf32>
      %32 = arith.divf %28, %31 : vector<16x128xf32>
      %c0_22 = arith.constant 0 : index
      %c0_23 = arith.constant 0 : index
      %33 = vector.load %arg7[%c0_22, %c0_23] : memref<16x128xf32, #tpu.memory_space<vmem>>, vector<16x128xf32>
      tpu.vector_store %arg7[%c0_22, %c0_23], %32 {strides = array<i32>} : memref<16x128xf32, #tpu.memory_space<vmem>>, vector<16x128xf32>,
    } else {
    }
    return
  }
  func.func @transform_0(%arg0: i32, %arg1: i32) -> (i32, i32) {
    %c0_i32 = arith.constant 0 : i32
    %c0_i32_0 = arith.constant 0 : i32
    return %arg0, %c0_i32 : i32, i32
  }
  func.func @transform_1(%arg0: i32, %arg1: i32) -> (i32, i32) {
    %c0_i32 = arith.constant 0 : i32
    %c0_i32_0 = arith.constant 0 : i32
    return %c0_i32, %arg1 : i32, i32
  }
  func.func @transform_2(%arg0: i32, %arg1: i32) -> (i32, i32) {
    %c0_i32 = arith.constant 0 : i32
    %c0_i32_0 = arith.constant 0 : i32
    return %c0_i32, %arg1 : i32, i32
  }
  func.func @transform_3(%arg0: i32, %arg1: i32) -> (i32, i32) {
    %c0_i32 = arith.constant 0 : i32
    %c0_i32_0 = arith.constant 0 : i32
    return %arg1, %c0_i32 : i32, i32
  }
  func.func @transform_4(%arg0: i32, %arg1: i32) -> (i32, i32) {
    %c0_i32 = arith.constant 0 : i32
    %c0_i32_0 = arith.constant 0 : i32
    %c0_i32_1 = arith.constant 0 : i32
    return %c0_i32, %c0_i32_0 : i32, i32
  }
  func.func @transform_5(%arg0: i32, %arg1: i32) -> (i32, i32) {
    %c0_i32 = arith.constant 0 : i32
    %c0_i32_0 = arith.constant 0 : i32
    return %arg0, %c0_i32 : i32, i32
  }
}

</mosaic_0001>

<bundles_post_ra>
// kernel: _mlp_forward_impl.1
= control target key start
LH: loop header
LB: loop body
LE: loop exit
PB: predicated region body
PF: predicated region fallthrough
CT: control target
= control target key end

     0   :  { %10 = vsyncpa [#allocation4], 0  ;;  %s538_s0 = inlined_call_operand.vmem [shape: bf16[16,128], index: 0, kind: input, shape index: {}]   ;;  %s539_s1 = inlined_call_operand.hbm [shape: bf16[128,128], index: 1, kind: input, shape index: {}]   ;;  %s540_s2 = inlined_call_operand.vmem [shape: f32[1,128], index: 2, kind: input, shape index: {}]   ;;  %s541_s3 = inlined_call_operand.hbm [shape: bf16[128,128], index: 3, kind: input, shape index: {}]   ;;  %s542_s4 = inlined_call_operand.vmem [shape: f32[1,128], index: 4, kind: input, shape index: {}]   ;;  %s543_s5 = inlined_call_operand.vmem [shape: f32[16,128], index: 5, kind: output, shape index: {}]  }
   0x1   :  { %11 = vsyncpa [#allocation6], 0  ;;  %s481_s18 = smov [#allocation3]  }
   0x2   :  { %s19_s19 = sshll.u32 %s481_s18, 4  ;;  %s20_s19 = int_to_ptr.vmem [resolvable:$true] %s19_s19 }
   0x3   :  { %s445_s20 = scalar_lea.vmem %s20_s19, 1024  ;;  %p450_p1 = scmp.lt.s32.totalorder %s20_s19, %s20_s19 }
   0x4   :  { %p446_p0 = scmp.ne.s32.totalorder %s20_s19, %s445_s20  ;;  %p451_p2 = scmp.lt.s32.totalorder %s445_s20, %s445_s20 }
   0x6   :  { %p452_p3 = por %p451_p2, %p450_p1 }
   0x8   :  { %p453_p4 = pnand %p452_p3, %p446_p0 }
   0xa   :  { %456 = shalt.err (!%p453_p4)
}
   0xb   :  { %s482_s21 = smov 64   ;;  %s483_s22 = smov 4  }
   0xc   :  { %25 = dma.hbm_to_vmem [thread:$0]  %s539_s1, 1024, %s20_s19, [#allocation4], %s482_s21, %s482_s21, %s483_s22  }
   0xd   :  { %s484_s25 = smov [#allocation5]  }
   0xe   :  { %s33_s26 = sshll.u32 %s484_s25, 4  ;;  %s34_s26 = int_to_ptr.vmem [resolvable:$true] %s33_s26 }
   0xf   :  { %s465_s27 = scalar_lea.vmem %s34_s26, 1024  ;;  %p470_p6 = scmp.lt.s32.totalorder %s34_s26, %s34_s26 }
  0x10   :  { %p466_p5 = scmp.ne.s32.totalorder %s34_s26, %s465_s27  ;;  %p471_p7 = scmp.lt.s32.totalorder %s465_s27, %s465_s27 }
  0x12   :  { %p472_p8 = por %p471_p7, %p470_p6 }
  0x14   :  { %p473_p9 = pnand %p472_p8, %p466_p5 }
  0x16   :  { %476 = shalt.err (!%p473_p9)
}
  0x17   :  { %39 = dma.hbm_to_vmem [thread:$0]  %s541_s3, 1024, %s34_s26, [#allocation6], %s482_s21, %s482_s21, %s483_s22  }
  0x18   :  { %477 = dma.done.wait [#allocation4], 1024  }
  0x19   :  { %478 = vsyncadd [#allocation4], 4294966272 }
  0x1a   :  { %479 = dma.done.wait [#allocation6], 1024  }
  0x1b   :  { %480 = vsyncadd [#allocation6], 4294966272  ;;  %v485_v0 = vmov 0.0   ;;  %vm486_vm0 = vmmov 0   ;;  %v412_v1 = vld [vmem:[#allocation3 + $0x38] sm:$0xff]   ;;  %v413_v2 = vld [vmem:[#allocation3 + $0x30] sm:$0xff]  }
  0x1c   :  { %366 = vmatprep.subr.bf16.mxu0 %v485_v0  ;;  %382 = vmatprep.mubr.msk.bf16.mxu0 %vm486_vm0, %v485_v0  ;;  %v414_v3 = vld [vmem:[#allocation3 + $0x28] sm:$0xff]   ;;  %v421_v4 = vld [vmem:[#allocation5 + $0x38] sm:$0xff]   ;;  %v415_v5 = vld [vmem:[#allocation3 + $0x20] sm:$0xff]  }
  0x1d   :  { %386 = vmatprep.subr.bf16.mxu1 %v485_v0  ;;  %402 = vmatprep.mubr.msk.bf16.mxu1 %vm486_vm0, %v485_v0  ;;  %v422_v6 = vld [vmem:[#allocation5 + $0x30] sm:$0xff]   ;;  %v416_v7 = vld [vmem:[#allocation3 + $0x18] sm:$0xff]   ;;  %v423_v8 = vld [vmem:[#allocation5 + $0x28] sm:$0xff]  }
  0x1e   :  { %367 = vmatpush3.bf16.msra.mxu0 %v412_v1  ;;  %387 = vmatpush3.bf16.msra.mxu1 %v421_v4  ;;  %v417_v9 = vld [vmem:[#allocation3 + $0x10] sm:$0xff]   ;;  %v424_v10 = vld [vmem:[#allocation5 + $0x20] sm:$0xff]   ;;  %v418_v11 = vld [vmem:[#allocation3 + $0x8] sm:$0xff]  }
  0x1f   :  { %368 = vmatprep.subr.bf16.mxu0 %v485_v0  ;;  %388 = vmatprep.subr.bf16.mxu1 %v485_v0  ;;  %v425_v12 = vld [vmem:[#allocation5 + $0x18] sm:$0xff]   ;;  %v419_v13 = vld [vmem:[#allocation3] sm:$0xff]   ;;  %v426_v15 = vld [vmem:[#allocation5 + $0x10] sm:$0xff]  }
  0x20   :  { %v420_v14 = vld [vmem:[%s538_s0] sm:$0xff]   ;;  %v427_v16 = vld [vmem:[#allocation5 + $0x8] sm:$0xff]  }
  0x21   :  { %v428_v17 = vld [vmem:[#allocation5] sm:$0xff]  }
  0x22   :  { %369 = vmatpush3.bf16.msra.mxu0 %v413_v2  ;;  %389 = vmatpush3.bf16.msra.mxu1 %v422_v6  ;;  %v329_v18 = vld [vmem:[%s540_s2] ss:$0 sm:$0xff] }
  0x23   :  { %370 = vmatprep.subr.bf16.mxu0 %v485_v0  ;;  %390 = vmatprep.subr.bf16.mxu1 %v485_v0  ;;  %v347_v28 = vld [vmem:[%s542_s4] ss:$0 sm:$0xff] }
  0x26   :  { %371 = vmatpush3.bf16.msra.mxu0 %v414_v3  ;;  %391 = vmatpush3.bf16.msra.mxu1 %v423_v8 }
  0x27   :  { %372 = vmatprep.subr.bf16.mxu0 %v485_v0  ;;  %392 = vmatprep.subr.bf16.mxu1 %v485_v0 }
  0x2a   :  { %373 = vmatpush3.bf16.msra.mxu0 %v415_v5  ;;  %393 = vmatpush3.bf16.msra.mxu1 %v424_v10 }
  0x2b   :  { %374 = vmatprep.subr.bf16.mxu0 %v485_v0  ;;  %394 = vmatprep.subr.bf16.mxu1 %v485_v0 }
  0x2e   :  { %375 = vmatpush3.bf16.msra.mxu0 %v416_v7  ;;  %395 = vmatpush3.bf16.msra.mxu1 %v425_v12 }
  0x2f   :  { %376 = vmatprep.subr.bf16.mxu0 %v485_v0  ;;  %396 = vmatprep.subr.bf16.mxu1 %v485_v0 }
  0x32   :  { %377 = vmatpush3.bf16.msra.mxu0 %v417_v9  ;;  %397 = vmatpush3.bf16.msra.mxu1 %v426_v15 }
  0x33   :  { %378 = vmatprep.subr.bf16.mxu0 %v485_v0  ;;  %398 = vmatprep.subr.bf16.mxu1 %v485_v0 }
  0x36   :  { %379 = vmatpush3.bf16.msra.mxu0 %v418_v11  ;;  %399 = vmatpush3.bf16.msra.mxu1 %v427_v16 }
  0x37   :  { %380 = vmatprep.subr.bf16.mxu0 %v485_v0  ;;  %400 = vmatprep.subr.bf16.mxu1 %v485_v0 }
  0x3a   :  { %381 = vmatpush3.bf16.msra.mxu0 %v419_v13  ;;  %401 = vmatpush3.bf16.msra.mxu1 %v428_v17 }
  0x3d   :  { %383 = vmatmul.mubr.bf16.vlgmr.msra.gmra.mxu0 %v420_v14 }
  0xfd   :  { %v168_v19 = vpop.f32.mrf.mxu0 }
  0xfe   :  { %v169_v21 = vadd.f32 %v329_v18, %v168_v19 }
  0xff   :  { %v384_v20 = vpop.f32.mrf.mxu0 }
 0x100   :  { %v175_v25 = vmax.f32 %v169_v21, 0.0 }
 0x101   :  { %v171_v22 = vpop.f32.mrf.mxu0 }
 0x102   :  { %v172_v23 = vadd.f32 %v329_v18, %v171_v22 }
 0x103   :  { %v385_v24 = vpop.f32.mrf.mxu0 }
 0x104   :  { %v176_v26 = vmax.f32 %v172_v23, 0.0 }
 0x106   :  { %v179_v27 = vpack.c.bf16 %v176_v26, %v175_v25 }
 0x108   :  { %403 = vmatmul.mubr.bf16.vlgmr.msra.gmra.mxu1 %v179_v27 }
 0x1c8   :  { %v278_v29 = vpop.f32.mrf.mxu1 }
 0x1c9   :  { %v301_v30 = vadd.f32 %v347_v28, %v278_v29 }
 0x1ca   :  { %v404_v31 = vpop.f32.mrf.mxu1 }
 0x1cb   :  { %303 = vmax.xlane.f32.xlu0 %v301_v30 }
 0x1cc   :  { %v281_v32 = vpop.f32.mrf.mxu1 }
 0x1cd   :  { %v302_v33 = vadd.f32 %v347_v28, %v281_v32 }
 0x1ce   :  { %v405_v34 = vpop.f32.mrf.mxu1 }
 0x1cf   :  { %305 = vmax.xlane.f32.xlu0 %v302_v33 }
 0x254   :  { %v304_v35 = vpop.xlane.xlu0 %303 }
 0x255   :  { %v307_v36 = vsub.f32 %v301_v30, %v304_v35 }
 0x257   :  { %v309_v37 = vmul.f32 1.442695, %v307_v36 }
 0x258   :  { %v306_v38 = vpop.xlane.xlu0 %305 }
 0x259   :  { %429 = vpow2.f32 %v309_v37  ;;  %v308_v39 = vsub.f32 %v302_v33, %v306_v38 }
 0x25b   :  { %v311_v40 = vmul.f32 1.442695, %v308_v39 }
 0x25d   :  { %431 = vpow2.f32 %v311_v40 }
 0x266   :  { %v430_v41 = vpop.eup %429 }
 0x267   :  { %313 = vadd.xlane.f32.xlu1 %v430_v41 }
 0x26a   :  { %v432_v42 = vpop.eup %431 }
 0x26b   :  { %315 = vadd.xlane.f32.xlu1 %v432_v42 }
 0x2f0   :  { %v314_v43 = vpop.xlane.xlu1 %313 }
 0x2f1   :  { %433 = vrcp.f32 %v314_v43 }
 0x2f4   :  { %v316_v44 = vpop.xlane.xlu1 %315 }
 0x2f5   :  { %435 = vrcp.f32 %v316_v44 }
 0x2fe   :  { %v434_v45 = vpop.eup %433 }
 0x2ff   :  { %v318_v46 = vmul.f32 %v434_v45, %v430_v41 }
 0x301   :  { %321 = vst [vmem:[%s543_s5] sm:$0xff] %v318_v46 }
 0x302   :  { %v436_v47 = vpop.eup %435 }
 0x303   :  { %v320_v48 = vmul.f32 %v436_v47, %v432_v42 }
 0x305   :  { %322 = vst [vmem:[%s543_s5 + $0x8] sm:$0xff] %v320_v48 }
 0x306   :  { %327 = vsyncpa [#allocation4], 1 }
 0x307   :  { %328 = vsyncpa [#allocation6], 1 }

</bundles_post_ra>
